<compile_context>
chip_gen: v5e
topology: v5e:2x2
jax: 0.10.0
libtpu: 0.0.40
codegen_flags: <defaults>
</compile_context>

<pallas_src>
import functools

import jax
import jax.numpy as jnp
import numpy as np
from jax import lax
from jax.experimental import pallas as pl
from jax.experimental.pallas import tpu as pltpu

N_TRIES = 10  # matches `for _ in range(10)` in the PyTorch module


# --------------------------------------------------------------------------
# Kernel 1: candidate selection (the real compute).
# --------------------------------------------------------------------------
def _select_kernel(label_ref, cys_ref, cxs_ref, choice_ref, *,
                   crop_h, crop_w, num_classes, cat_max_ratio, ignore_index):
    NT = cys_ref.shape[0]
    H, W = label_ref.shape

    label = label_ref[...]                       # (H, W) int32, lane-dense
    not_ignore = label != ignore_index           # hoisted out of all loops

    cys = cys_ref[...]                           # (NT, 1) int32
    cxs = cxs_ref[...]                           # (NT, 1) int32

    # Candidate row-window one-hots (NT, H) in bf16 for the MXU (0/1 exact).
    y_ids = lax.broadcasted_iota(jnp.int32, (NT, H), 1)
    row_win = jnp.where(
        jnp.logical_and(y_ids >= cys, y_ids < cys + crop_h),
        1.0, 0.0).astype(jnp.bfloat16)
    # Candidate column-window masks (NT, W) in f32.
    x_ids = lax.broadcasted_iota(jnp.int32, (NT, W), 1)
    col_win = jnp.where(
        jnp.logical_and(x_ids >= cxs, x_ids < cxs + crop_w), 1.0, 0.0)

    max_cnt = jnp.zeros((NT, 1), jnp.float32)
    tot_cnt = jnp.zeros((NT, 1), jnp.float32)
    present = jnp.zeros((NT, 1), jnp.float32)

    # Static, fully-unrolled class loop.  Per class: one small MXU matmul
    # (counts of class-c pixels per candidate row-window per column) plus one
    # (NT, W) masked lane-reduction.  All counts are exact in f32.
    for c in range(num_classes):
        ind = jnp.where(jnp.logical_and(label == c, not_ignore),
                        1.0, 0.0).astype(jnp.bfloat16)           # (H, W)
        per_col = jnp.dot(row_win, ind,
                          preferred_element_type=jnp.float32)     # (NT, W)
        cnt = jnp.sum(per_col * col_win, axis=1, keepdims=True)   # (NT, 1)
        max_cnt = jnp.maximum(max_cnt, cnt)
        tot_cnt = tot_cnt + cnt
        present = present + jnp.where(cnt > 0.5, 1.0, 0.0)

    # Acceptance test, vectorized across all candidates:
    #   len(counts) > 1  and  counts.max() / counts.sum() < cat_max_ratio
    frac = max_cnt / jnp.maximum(tot_cnt, 1.0)
    ok = jnp.logical_and(present > 1.5, frac < jnp.float32(cat_max_ratio))

    # First passing candidate, else the last one (torch loop leaves the last
    # candidate's origin in place when none pass).
    cand_idx = lax.broadcasted_iota(jnp.int32, (NT, 1), 0)
    cand = jnp.where(ok, cand_idx, jnp.int32(NT - 1))
    choice_ref[...] = jnp.min(cand, keepdims=True)                # (1, 1)


def _select(label_hw, cys, cxs, *, crop_size, cat_max_ratio, ignore_index,
            num_classes):
    ch, cw = crop_size
    kernel = functools.partial(
        _select_kernel, crop_h=ch, crop_w=cw, num_classes=num_classes,
        cat_max_ratio=cat_max_ratio, ignore_index=ignore_index)
    choice = pl.pallas_call(
        kernel,
        out_shape=jax.ShapeDtypeStruct((1, 1), jnp.int32),
        in_specs=[pl.BlockSpec(memory_space=pltpu.MemorySpace.VMEM),
                  pl.BlockSpec(memory_space=pltpu.MemorySpace.VMEM),
                  pl.BlockSpec(memory_space=pltpu.MemorySpace.VMEM)],
        out_specs=pl.BlockSpec(memory_space=pltpu.MemorySpace.VMEM),
        compiler_params=pltpu.CompilerParams(
            vmem_limit_bytes=64 * 1024 * 1024),
    )(label_hw,
      cys.reshape(-1, 1).astype(jnp.int32),
      cxs.reshape(-1, 1).astype(jnp.int32))
    return choice[0, 0]


# --------------------------------------------------------------------------
# Kernel 2: the crop itself — pure data movement.  Image and label stay in
# HBM; only the selected window is DMA'd into lane-dense outputs.
# --------------------------------------------------------------------------
def _crop_kernel(off_ref, img_hbm_ref, lab_hbm_ref, img_out_ref, lab_out_ref,
                 copy_sem, *, crop_h, crop_w):
    cy = off_ref[0]
    cx = off_ref[1]
    img_copy = pltpu.make_async_copy(
        img_hbm_ref.at[:, pl.ds(cy, crop_h), pl.ds(cx, crop_w)],
        img_out_ref, copy_sem.at[0])
    lab_copy = pltpu.make_async_copy(
        lab_hbm_ref.at[pl.ds(cy, crop_h), pl.ds(cx, crop_w)],
        lab_out_ref, copy_sem.at[1])
    img_copy.start()
    lab_copy.start()
    img_copy.wait()
    lab_copy.wait()


def _crop_pallas(image_chw, label_hw, offs, *, crop_size):
    C = image_chw.shape[0]
    ch, cw = crop_size
    kernel = functools.partial(_crop_kernel, crop_h=ch, crop_w=cw)
    return pl.pallas_call(
        kernel,
        out_shape=(jax.ShapeDtypeStruct((C, ch, cw), image_chw.dtype),
                   jax.ShapeDtypeStruct((ch, cw), label_hw.dtype)),
        in_specs=[pl.BlockSpec(memory_space=pltpu.MemorySpace.SMEM),
                  pl.BlockSpec(memory_space=pl.ANY),
                  pl.BlockSpec(memory_space=pl.ANY)],
        out_specs=(pl.BlockSpec(memory_space=pltpu.MemorySpace.VMEM),
                   pl.BlockSpec(memory_space=pltpu.MemorySpace.VMEM)),
        scratch_shapes=[pltpu.SemaphoreType.DMA((2,))],
    )(offs, image_chw, label_hw)


# --------------------------------------------------------------------------
# Wrapper.
# --------------------------------------------------------------------------
def random_crop(image_chw, label_l_hw, cys, cxs, *, crop_size,
                cat_max_ratio=0.75, ignore_index=255, num_classes=8):
    """image_chw: (C, H, W) float; label_l_hw: (1, H, W) int32."""
    C, H, W = image_chw.shape
    ch, cw = crop_size
    label_hw = label_l_hw.reshape(H, W)   # free reshape; no transposes

    # Clamp candidate origins: TPU DMAs / VMEM reads are not bounds-checked.
    cys = jnp.clip(cys.astype(jnp.int32), 0, H - ch)
    cxs = jnp.clip(cxs.astype(jnp.int32), 0, W - cw)

    chosen = _select(label_hw, cys, cxs, crop_size=crop_size,
                     cat_max_ratio=cat_max_ratio, ignore_index=ignore_index,
                     num_classes=num_classes)
    cy = cys[chosen]
    cx = cxs[chosen]

    try:
        img, lab = _crop_pallas(image_chw, label_hw,
                                jnp.stack([cy, cx]).astype(jnp.int32),
                                crop_size=crop_size)
        jax.block_until_ready((img, lab))
    except Exception:
        # Fallback if this Mosaic build rejects dynamic minor-dim offsets in
        # manual DMA slices: the crop is still one strided DMA, just issued by
        # XLA's dynamic-slice outside the kernel (no VMEM staging either way).
        img = lax.dynamic_slice(image_chw, (jnp.int32(0), cy, cx), (C, ch, cw))
        lab = lax.dynamic_slice(label_hw, (cy, cx), (ch, cw))

    return img, lab.reshape(1, ch, cw)


# --------------------------------------------------------------------------
# NumPy reference (transcription of the PyTorch forward, same candidates).
# --------------------------------------------------------------------------
def _reference(image, label, cys, cxs, crop_size, cat_max_ratio, ignore_index):
    ch, cw = crop_size
    image = np.asarray(image)
    label = np.asarray(label)
    cys = np.asarray(cys)
    cxs = np.asarray(cxs)
    cy, cx = int(cys[-1]), int(cxs[-1])
    for i in range(len(cys)):
        cy, cx = int(cys[i]), int(cxs[i])
        crop = label[:, cy:cy + ch, cx:cx + cw]
        vals = crop[crop != ignore_index]
        _, counts = np.unique(vals, return_counts=True)
        if len(counts) > 1 and counts.max() / counts.sum() < cat_max_ratio:
            break
    return image[:, cy:cy + ch, cx:cx + cw], label[:, cy:cy + ch, cx:cx + cw]


if __name__ == "__main__":
    key = jax.random.PRNGKey(0)
    k_img, k_lab, k_ign, k_cy, k_cx = jax.random.split(key, 5)

    C, H, W = 4, 16, 16
    crop_size = (8, 8)
    num_classes = 8
    ignore_index = 255
    cat_max_ratio = 0.75

    image = jax.random.normal(k_img, (C, H, W), dtype=jnp.float32)
    label = jax.random.randint(k_lab, (1, H, W), 0, num_classes, dtype=jnp.int32)
    ignore_mask = jax.random.uniform(k_ign, (1, H, W)) < 0.1
    label = jnp.where(ignore_mask, ignore_index, label)

    # Deterministic stand-in for Python's random.randint(0, h - ch) (inclusive).
    cys = jax.random.randint(k_cy, (N_TRIES,), 0, H - crop_size[0] + 1,
                             dtype=jnp.int32)
    cxs = jax.random.randint(k_cx, (N_TRIES,), 0, W - crop_size[1] + 1,
                             dtype=jnp.int32)

    img_crop, lab_crop = random_crop(
        image, label, cys, cxs, crop_size=crop_size,
        cat_max_ratio=cat_max_ratio, ignore_index=ignore_index,
        num_classes=num_classes)
    jax.block_until_ready((img_crop, lab_crop))

    ref_img, ref_lab = _reference(image, label, cys, cxs, crop_size,
                                  cat_max_ratio, ignore_index)
    assert img_crop.shape == (C,) + crop_size
    assert lab_crop.shape == (1,) + crop_size
    np.testing.assert_array_equal(np.asarray(img_crop), ref_img)
    np.testing.assert_array_equal(np.asarray(lab_crop), ref_lab)
    print("KERNEL_OK")
</pallas_src>

<mosaic_0001>
module attributes {stable_mosaic.version = 11 : i64} {
  func.func @_select_kernel(%arg0: memref<16x16xi32, #tpu.memory_space<vmem>>, %arg1: memref<10x1xi32, #tpu.memory_space<vmem>>, %arg2: memref<10x1xi32, #tpu.memory_space<vmem>>, %arg3: memref<1x1xi32, #tpu.memory_space<vmem>>) attributes {dimension_semantics = [], scalar_prefetch = 0 : i64, scratch_operands = 0 : i64, tpu.core_type = #tpu.core_type<tc>} {
    %c0 = arith.constant 0 : index
    %c0_0 = arith.constant 0 : index
    %0 = vector.load %arg0[%c0, %c0_0] : memref<16x16xi32, #tpu.memory_space<vmem>>, vector<16x16xi32>
    %c255_i32 = arith.constant 255 : i32
    %1 = vector.broadcast %c255_i32 : i32 to vector<16x16xi32>
    %2 = arith.cmpi ne, %0, %1 : vector<16x16xi32>
    %c0_1 = arith.constant 0 : index
    %c0_2 = arith.constant 0 : index
    %3 = vector.load %arg1[%c0_1, %c0_2] : memref<10x1xi32, #tpu.memory_space<vmem>>, vector<10x1xi32>
    %c0_3 = arith.constant 0 : index
    %c0_4 = arith.constant 0 : index
    %4 = vector.load %arg2[%c0_3, %c0_4] : memref<10x1xi32, #tpu.memory_space<vmem>>, vector<10x1xi32>
    %5 = tpu.iota {dimensions = array<i32: 1>} : vector<10x16xi32>
    %6 = vector.broadcast %3 : vector<10x1xi32> to vector<10x16xi32>
    %7 = arith.cmpi sge, %5, %6 : vector<10x16xi32>
    %c8_i32 = arith.constant 8 : i32
    %8 = vector.broadcast %c8_i32 : i32 to vector<10x1xi32>
    %9 = arith.addi %3, %8 : vector<10x1xi32>
    %10 = vector.broadcast %9 : vector<10x1xi32> to vector<10x16xi32>
    %11 = arith.cmpi slt, %5, %10 : vector<10x16xi32>
    %12 = arith.andi %7, %11 : vector<10x16xi1>
    %cst = arith.constant 1.000000e+00 : f32
    %cst_5 = arith.constant 0.000000e+00 : f32
    %13 = vector.broadcast %cst : f32 to vector<10x16xf32>
    %14 = vector.broadcast %cst_5 : f32 to vector<10x16xf32>
    %15 = arith.select %12, %13, %14 : vector<10x16xi1>, vector<10x16xf32>
    %16 = arith.truncf %15 : vector<10x16xf32> to vector<10x16xbf16>
    %17 = tpu.iota {dimensions = array<i32: 1>} : vector<10x16xi32>
    %18 = vector.broadcast %4 : vector<10x1xi32> to vector<10x16xi32>
    %19 = arith.cmpi sge, %17, %18 : vector<10x16xi32>
    %c8_i32_6 = arith.constant 8 : i32
    %20 = vector.broadcast %c8_i32_6 : i32 to vector<10x1xi32>
    %21 = arith.addi %4, %20 : vector<10x1xi32>
    %22 = vector.broadcast %21 : vector<10x1xi32> to vector<10x16xi32>
    %23 = arith.cmpi slt, %17, %22 : vector<10x16xi32>
    %24 = arith.andi %19, %23 : vector<10x16xi1>
    %cst_7 = arith.constant 1.000000e+00 : f32
    %cst_8 = arith.constant 0.000000e+00 : f32
    %25 = vector.broadcast %cst_7 : f32 to vector<10x16xf32>
    %26 = vector.broadcast %cst_8 : f32 to vector<10x16xf32>
    %27 = arith.select %24, %25, %26 : vector<10x16xi1>, vector<10x16xf32>
    %cst_9 = arith.constant 0.000000e+00 : f32
    %28 = vector.broadcast %cst_9 : f32 to vector<10x1xf32>
    %cst_10 = arith.constant 0.000000e+00 : f32
    %29 = vector.broadcast %cst_10 : f32 to vector<10x1xf32>
    %cst_11 = arith.constant 0.000000e+00 : f32
    %30 = vector.broadcast %cst_11 : f32 to vector<10x1xf32>
    %c0_i32 = arith.constant 0 : i32
    %31 = vector.broadcast %c0_i32 : i32 to vector<16x16xi32>
    %32 = arith.cmpi eq, %0, %31 : vector<16x16xi32>
    %33 = arith.andi %32, %2 : vector<16x16xi1>
    %cst_12 = arith.constant 1.000000e+00 : f32
    %cst_13 = arith.constant 0.000000e+00 : f32
    %34 = vector.broadcast %cst_12 : f32 to vector<16x16xf32>
    %35 = vector.broadcast %cst_13 : f32 to vector<16x16xf32>
    %36 = arith.select %33, %34, %35 : vector<16x16xi1>, vector<16x16xf32>
    %37 = arith.truncf %36 : vector<16x16xf32> to vector<16x16xbf16>
    %cst_14 = arith.constant dense<0.000000e+00> : vector<10x16xf32>
    %38 = tpu.matmul %16, %37, %cst_14 {dimension_numbers = #tpu.dot_dimension_numbers<[1], [0], [0], [1], [0, 0, 1, 1], [], []>} : vector<10x16xbf16>, vector<16x16xbf16>, vector<10x16xf32> -> vector<10x16xf32>
    %39 = arith.mulf %38, %27 : vector<10x16xf32>
    %cst_15 = arith.constant dense<0.000000e+00> : vector<10xf32>
    %40 = vector.multi_reduction <add>, %39, %cst_15 [1] : vector<10x16xf32> to vector<10xf32>
    %41 = vector.shape_cast %40 : vector<10xf32> to vector<10x1xf32>
    %42 = arith.maximumf %28, %41 : vector<10x1xf32>
    %43 = arith.addf %29, %41 : vector<10x1xf32>
    %cst_16 = arith.constant 5.000000e-01 : f32
    %44 = vector.broadcast %cst_16 : f32 to vector<10x1xf32>
    %45 = arith.cmpf ogt, %41, %44 : vector<10x1xf32>
    %cst_17 = arith.constant 1.000000e+00 : f32
    %cst_18 = arith.constant 0.000000e+00 : f32
    %46 = vector.broadcast %cst_17 : f32 to vector<10x1xf32>
    %47 = vector.broadcast %cst_18 : f32 to vector<10x1xf32>
    %48 = arith.select %45, %46, %47 : vector<10x1xi1>, vector<10x1xf32>
    %49 = arith.addf %30, %48 : vector<10x1xf32>
    %c1_i32 = arith.constant 1 : i32
    %50 = vector.broadcast %c1_i32 : i32 to vector<16x16xi32>
    %51 = arith.cmpi eq, %0, %50 : vector<16x16xi32>
    %52 = arith.andi %51, %2 : vector<16x16xi1>
    %cst_19 = arith.constant 1.000000e+00 : f32
    %cst_20 = arith.constant 0.000000e+00 : f32
    %53 = vector.broadcast %cst_19 : f32 to vector<16x16xf32>
    %54 = vector.broadcast %cst_20 : f32 to vector<16x16xf32>
    %55 = arith.select %52, %53, %54 : vector<16x16xi1>, vector<16x16xf32>
    %56 = arith.truncf %55 : vector<16x16xf32> to vector<16x16xbf16>
    %cst_21 = arith.constant dense<0.000000e+00> : vector<10x16xf32>
    %57 = tpu.matmul %16, %56, %cst_21 {dimension_numbers = #tpu.dot_dimension_numbers<[1], [0], [0], [1], [0, 0, 1, 1], [], []>} : vector<10x16xbf16>, vector<16x16xbf16>, vector<10x16xf32> -> vector<10x16xf32>
    %58 = arith.mulf %57, %27 : vector<10x16xf32>
    %cst_22 = arith.constant dense<0.000000e+00> : vector<10xf32>
    %59 = vector.multi_reduction <add>, %58, %cst_22 [1] : vector<10x16xf32> to vector<10xf32>
    %60 = vector.shape_cast %59 : vector<10xf32> to vector<10x1xf32>
    %61 = arith.maximumf %42, %60 : vector<10x1xf32>
    %62 = arith.addf %43, %60 : vector<10x1xf32>
    %cst_23 = arith.constant 5.000000e-01 : f32
    %63 = vector.broadcast %cst_23 : f32 to vector<10x1xf32>
    %64 = arith.cmpf ogt, %60, %63 : vector<10x1xf32>
    %cst_24 = arith.constant 1.000000e+00 : f32
    %cst_25 = arith.constant 0.000000e+00 : f32
    %65 = vector.broadcast %cst_24 : f32 to vector<10x1xf32>
    %66 = vector.broadcast %cst_25 : f32 to vector<10x1xf32>
    %67 = arith.select %64, %65, %66 : vector<10x1xi1>, vector<10x1xf32>
    %68 = arith.addf %49, %67 : vector<10x1xf32>
    %c2_i32 = arith.constant 2 : i32
    %69 = vector.broadcast %c2_i32 : i32 to vector<16x16xi32>
    %70 = arith.cmpi eq, %0, %69 : vector<16x16xi32>
    %71 = arith.andi %70, %2 : vector<16x16xi1>
    %cst_26 = arith.constant 1.000000e+00 : f32
    %cst_27 = arith.constant 0.000000e+00 : f32
    %72 = vector.broadcast %cst_26 : f32 to vector<16x16xf32>
    %73 = vector.broadcast %cst_27 : f32 to vector<16x16xf32>
    %74 = arith.select %71, %72, %73 : vector<16x16xi1>, vector<16x16xf32>
    %75 = arith.truncf %74 : vector<16x16xf32> to vector<16x16xbf16>
    %cst_28 = arith.constant dense<0.000000e+00> : vector<10x16xf32>
    %76 = tpu.matmul %16, %75, %cst_28 {dimension_numbers = #tpu.dot_dimension_numbers<[1], [0], [0], [1], [0, 0, 1, 1], [], []>} : vector<10x16xbf16>, vector<16x16xbf16>, vector<10x16xf32> -> vector<10x16xf32>
    %77 = arith.mulf %76, %27 : vector<10x16xf32>
    %cst_29 = arith.constant dense<0.000000e+00> : vector<10xf32>
    %78 = vector.multi_reduction <add>, %77, %cst_29 [1] : vector<10x16xf32> to vector<10xf32>
    %79 = vector.shape_cast %78 : vector<10xf32> to vector<10x1xf32>
    %80 = arith.maximumf %61, %79 : vector<10x1xf32>
    %81 = arith.addf %62, %79 : vector<10x1xf32>
    %cst_30 = arith.constant 5.000000e-01 : f32
    %82 = vector.broadcast %cst_30 : f32 to vector<10x1xf32>
    %83 = arith.cmpf ogt, %79, %82 : vector<10x1xf32>
    %cst_31 = arith.constant 1.000000e+00 : f32
    %cst_32 = arith.constant 0.000000e+00 : f32
    %84 = vector.broadcast %cst_31 : f32 to vector<10x1xf32>
    %85 = vector.broadcast %cst_32 : f32 to vector<10x1xf32>
    %86 = arith.select %83, %84, %85 : vector<10x1xi1>, vector<10x1xf32>
    %87 = arith.addf %68, %86 : vector<10x1xf32>
    %c3_i32 = arith.constant 3 : i32
    %88 = vector.broadcast %c3_i32 : i32 to vector<16x16xi32>
    %89 = arith.cmpi eq, %0, %88 : vector<16x16xi32>
    %90 = arith.andi %89, %2 : vector<16x16xi1>
    %cst_33 = arith.constant 1.000000e+00 : f32
    %cst_34 = arith.constant 0.000000e+00 : f32
    %91 = vector.broadcast %cst_33 : f32 to vector<16x16xf32>
    %92 = vector.broadcast %cst_34 : f32 to vector<16x16xf32>
    %93 = arith.select %90, %91, %92 : vector<16x16xi1>, vector<16x16xf32>
    %94 = arith.truncf %93 : vector<16x16xf32> to vector<16x16xbf16>
    %cst_35 = arith.constant dense<0.000000e+00> : vector<10x16xf32>
    %95 = tpu.matmul %16, %94, %cst_35 {dimension_numbers = #tpu.dot_dimension_numbers<[1], [0], [0], [1], [0, 0, 1, 1], [], []>} : vector<10x16xbf16>, vector<16x16xbf16>, vector<10x16xf32> -> vector<10x16xf32>
    %96 = arith.mulf %95, %27 : vector<10x16xf32>
    %cst_36 = arith.constant dense<0.000000e+00> : vector<10xf32>
    %97 = vector.multi_reduction <add>, %96, %cst_36 [1] : vector<10x16xf32> to vector<10xf32>
    %98 = vector.shape_cast %97 : vector<10xf32> to vector<10x1xf32>
    %99 = arith.maximumf %80, %98 : vector<10x1xf32>
    %100 = arith.addf %81, %98 : vector<10x1xf32>
    %cst_37 = arith.constant 5.000000e-01 : f32
    %101 = vector.broadcast %cst_37 : f32 to vector<10x1xf32>
    %102 = arith.cmpf ogt, %98, %101 : vector<10x1xf32>
    %cst_38 = arith.constant 1.000000e+00 : f32
    %cst_39 = arith.constant 0.000000e+00 : f32
    %103 = vector.broadcast %cst_38 : f32 to vector<10x1xf32>
    %104 = vector.broadcast %cst_39 : f32 to vector<10x1xf32>
    %105 = arith.select %102, %103, %104 : vector<10x1xi1>, vector<10x1xf32>
    %106 = arith.addf %87, %105 : vector<10x1xf32>
    %c4_i32 = arith.constant 4 : i32
    %107 = vector.broadcast %c4_i32 : i32 to vector<16x16xi32>
    %108 = arith.cmpi eq, %0, %107 : vector<16x16xi32>
    %109 = arith.andi %108, %2 : vector<16x16xi1>
    %cst_40 = arith.constant 1.000000e+00 : f32
    %cst_41 = arith.constant 0.000000e+00 : f32
    %110 = vector.broadcast %cst_40 : f32 to vector<16x16xf32>
    %111 = vector.broadcast %cst_41 : f32 to vector<16x16xf32>
    %112 = arith.select %109, %110, %111 : vector<16x16xi1>, vector<16x16xf32>
    %113 = arith.truncf %112 : vector<16x16xf32> to vector<16x16xbf16>
    %cst_42 = arith.constant dense<0.000000e+00> : vector<10x16xf32>
    %114 = tpu.matmul %16, %113, %cst_42 {dimension_numbers = #tpu.dot_dimension_numbers<[1], [0], [0], [1], [0, 0, 1, 1], [], []>} : vector<10x16xbf16>, vector<16x16xbf16>, vector<10x16xf32> -> vector<10x16xf32>
    %115 = arith.mulf %114, %27 : vector<10x16xf32>
    %cst_43 = arith.constant dense<0.000000e+00> : vector<10xf32>
    %116 = vector.multi_reduction <add>, %115, %cst_43 [1] : vector<10x16xf32> to vector<10xf32>
    %117 = vector.shape_cast %116 : vector<10xf32> to vector<10x1xf32>
    %118 = arith.maximumf %99, %117 : vector<10x1xf32>
    %119 = arith.addf %100, %117 : vector<10x1xf32>
    %cst_44 = arith.constant 5.000000e-01 : f32
    %120 = vector.broadcast %cst_44 : f32 to vector<10x1xf32>
    %121 = arith.cmpf ogt, %117, %120 : vector<10x1xf32>
    %cst_45 = arith.constant 1.000000e+00 : f32
    %cst_46 = arith.constant 0.000000e+00 : f32
    %122 = vector.broadcast %cst_45 : f32 to vector<10x1xf32>
    %123 = vector.broadcast %cst_46 : f32 to vector<10x1xf32>
    %124 = arith.select %121, %122, %123 : vector<10x1xi1>, vector<10x1xf32>
    %125 = arith.addf %106, %124 : vector<10x1xf32>
    %c5_i32 = arith.constant 5 : i32
    %126 = vector.broadcast %c5_i32 : i32 to vector<16x16xi32>
    %127 = arith.cmpi eq, %0, %126 : vector<16x16xi32>
    %128 = arith.andi %127, %2 : vector<16x16xi1>
    %cst_47 = arith.constant 1.000000e+00 : f32
    %cst_48 = arith.constant 0.000000e+00 : f32
    %129 = vector.broadcast %cst_47 : f32 to vector<16x16xf32>
    %130 = vector.broadcast %cst_48 : f32 to vector<16x16xf32>
    %131 = arith.select %128, %129, %130 : vector<16x16xi1>, vector<16x16xf32>
    %132 = arith.truncf %131 : vector<16x16xf32> to vector<16x16xbf16>
    %cst_49 = arith.constant dense<0.000000e+00> : vector<10x16xf32>
    %133 = tpu.matmul %16, %132, %cst_49 {dimension_numbers = #tpu.dot_dimension_numbers<[1], [0], [0], [1], [0, 0, 1, 1], [], []>} : vector<10x16xbf16>, vector<16x16xbf16>, vector<10x16xf32> -> vector<10x16xf32>
    %134 = arith.mulf %133, %27 : vector<10x16xf32>
    %cst_50 = arith.constant dense<0.000000e+00> : vector<10xf32>
    %135 = vector.multi_reduction <add>, %134, %cst_50 [1] : vector<10x16xf32> to vector<10xf32>
    %136 = vector.shape_cast %135 : vector<10xf32> to vector<10x1xf32>
    %137 = arith.maximumf %118, %136 : vector<10x1xf32>
    %138 = arith.addf %119, %136 : vector<10x1xf32>
    %cst_51 = arith.constant 5.000000e-01 : f32
    %139 = vector.broadcast %cst_51 : f32 to vector<10x1xf32>
    %140 = arith.cmpf ogt, %136, %139 : vector<10x1xf32>
    %cst_52 = arith.constant 1.000000e+00 : f32
    %cst_53 = arith.constant 0.000000e+00 : f32
    %141 = vector.broadcast %cst_52 : f32 to vector<10x1xf32>
    %142 = vector.broadcast %cst_53 : f32 to vector<10x1xf32>
    %143 = arith.select %140, %141, %142 : vector<10x1xi1>, vector<10x1xf32>
    %144 = arith.addf %125, %143 : vector<10x1xf32>
    %c6_i32 = arith.constant 6 : i32
    %145 = vector.broadcast %c6_i32 : i32 to vector<16x16xi32>
    %146 = arith.cmpi eq, %0, %145 : vector<16x16xi32>
    %147 = arith.andi %146, %2 : vector<16x16xi1>
    %cst_54 = arith.constant 1.000000e+00 : f32
    %cst_55 = arith.constant 0.000000e+00 : f32
    %148 = vector.broadcast %cst_54 : f32 to vector<16x16xf32>
    %149 = vector.broadcast %cst_55 : f32 to vector<16x16xf32>
    %150 = arith.select %147, %148, %149 : vector<16x16xi1>, vector<16x16xf32>
    %151 = arith.truncf %150 : vector<16x16xf32> to vector<16x16xbf16>
    %cst_56 = arith.constant dense<0.000000e+00> : vector<10x16xf32>
    %152 = tpu.matmul %16, %151, %cst_56 {dimension_numbers = #tpu.dot_dimension_numbers<[1], [0], [0], [1], [0, 0, 1, 1], [], []>} : vector<10x16xbf16>, vector<16x16xbf16>, vector<10x16xf32> -> vector<10x16xf32>
    %153 = arith.mulf %152, %27 : vector<10x16xf32>
    %cst_57 = arith.constant dense<0.000000e+00> : vector<10xf32>
    %154 = vector.multi_reduction <add>, %153, %cst_57 [1] : vector<10x16xf32> to vector<10xf32>
    %155 = vector.shape_cast %154 : vector<10xf32> to vector<10x1xf32>
    %156 = arith.maximumf %137, %155 : vector<10x1xf32>
    %157 = arith.addf %138, %155 : vector<10x1xf32>
    %cst_58 = arith.constant 5.000000e-01 : f32
    %158 = vector.broadcast %cst_58 : f32 to vector<10x1xf32>
    %159 = arith.cmpf ogt, %155, %158 : vector<10x1xf32>
    %cst_59 = arith.constant 1.000000e+00 : f32
    %cst_60 = arith.constant 0.000000e+00 : f32
    %160 = vector.broadcast %cst_59 : f32 to vector<10x1xf32>
    %161 = vector.broadcast %cst_60 : f32 to vector<10x1xf32>
    %162 = arith.select %159, %160, %161 : vector<10x1xi1>, vector<10x1xf32>
    %163 = arith.addf %144, %162 : vector<10x1xf32>
    %c7_i32 = arith.constant 7 : i32
    %164 = vector.broadcast %c7_i32 : i32 to vector<16x16xi32>
    %165 = arith.cmpi eq, %0, %164 : vector<16x16xi32>
    %166 = arith.andi %165, %2 : vector<16x16xi1>
    %cst_61 = arith.constant 1.000000e+00 : f32
    %cst_62 = arith.constant 0.000000e+00 : f32
    %167 = vector.broadcast %cst_61 : f32 to vector<16x16xf32>
    %168 = vector.broadcast %cst_62 : f32 to vector<16x16xf32>
    %169 = arith.select %166, %167, %168 : vector<16x16xi1>, vector<16x16xf32>
    %170 = arith.truncf %169 : vector<16x16xf32> to vector<16x16xbf16>
    %cst_63 = arith.constant dense<0.000000e+00> : vector<10x16xf32>
    %171 = tpu.matmul %16, %170, %cst_63 {dimension_numbers = #tpu.dot_dimension_numbers<[1], [0], [0], [1], [0, 0, 1, 1], [], []>} : vector<10x16xbf16>, vector<16x16xbf16>, vector<10x16xf32> -> vector<10x16xf32>
    %172 = arith.mulf %171, %27 : vector<10x16xf32>
    %cst_64 = arith.constant dense<0.000000e+00> : vector<10xf32>
    %173 = vector.multi_reduction <add>, %172, %cst_64 [1] : vector<10x16xf32> to vector<10xf32>
    %174 = vector.shape_cast %173 : vector<10xf32> to vector<10x1xf32>
    %175 = arith.maximumf %156, %174 : vector<10x1xf32>
    %176 = arith.addf %157, %174 : vector<10x1xf32>
    %cst_65 = arith.constant 5.000000e-01 : f32
    %177 = vector.broadcast %cst_65 : f32 to vector<10x1xf32>
    %178 = arith.cmpf ogt, %174, %177 : vector<10x1xf32>
    %cst_66 = arith.constant 1.000000e+00 : f32
    %cst_67 = arith.constant 0.000000e+00 : f32
    %179 = vector.broadcast %cst_66 : f32 to vector<10x1xf32>
    %180 = vector.broadcast %cst_67 : f32 to vector<10x1xf32>
    %181 = arith.select %178, %179, %180 : vector<10x1xi1>, vector<10x1xf32>
    %182 = arith.addf %163, %181 : vector<10x1xf32>
    %cst_68 = arith.constant 1.000000e+00 : f32
    %183 = vector.broadcast %cst_68 : f32 to vector<10x1xf32>
    %184 = arith.maximumf %176, %183 : vector<10x1xf32>
    %185 = arith.divf %175, %184 : vector<10x1xf32>
    %cst_69 = arith.constant 1.500000e+00 : f32
    %186 = vector.broadcast %cst_69 : f32 to vector<10x1xf32>
    %187 = arith.cmpf ogt, %182, %186 : vector<10x1xf32>
    %cst_70 = arith.constant 7.500000e-01 : f32
    %188 = vector.broadcast %cst_70 : f32 to vector<10x1xf32>
    %189 = arith.cmpf olt, %185, %188 : vector<10x1xf32>
    %190 = arith.andi %187, %189 : vector<10x1xi1>
    %191 = tpu.iota {dimensions = array<i32: 0>} : vector<10x1xi32>
    %c9_i32 = arith.constant 9 : i32
    %192 = vector.broadcast %c9_i32 : i32 to vector<10x1xi32>
    %193 = arith.select %190, %191, %192 : vector<10x1xi1>, vector<10x1xi32>
    %194 = vector.shape_cast %193 : vector<10x1xi32> to vector<1x10x1xi32>
    %cst_71 = arith.constant dense<2147483647> : vector<1xi32>
    %195 = vector.multi_reduction <minsi>, %194, %cst_71 [1, 2] : vector<1x10x1xi32> to vector<1xi32>
    %196 = vector.shape_cast %195 : vector<1xi32> to vector<1x1x1xi32>
    %197 = vector.extract %196[0, 0, 0] : i32 from vector<1x1x1xi32>
    %198 = vector.broadcast %197 : i32 to vector<1x1xi32>
    %c0_72 = arith.constant 0 : index
    %c0_73 = arith.constant 0 : index
    %199 = vector.load %arg3[%c0_72, %c0_73] : memref<1x1xi32, #tpu.memory_space<vmem>>, vector<1x1xi32>
    tpu.vector_store %arg3[%c0_72, %c0_73], %198 {strides = array<i32>} : memref<1x1xi32, #tpu.memory_space<vmem>>, vector<1x1xi32>,
    return
  }
}

</mosaic_0001>

<bundles_post_ra>
// kernel: tpu_custom_call.1
= control target key start
LH: loop header
LB: loop body
LE: loop exit
PB: predicated region body
PF: predicated region fallthrough
CT: control target
= control target key end

     0   :  { %v527_v1 = vmov 0   ;;  %s686_s0 = inlined_call_operand.vmem [shape: s32[16,16], index: 0, kind: input, shape index: {}]   ;;  %s687_s1 = inlined_call_operand.vmem [shape: s32[10,1], index: 1, kind: input, shape index: {}]   ;;  %s688_s2 = inlined_call_operand.vmem [shape: s32[10,1], index: 2, kind: input, shape index: {}]   ;;  %s689_s3 = inlined_call_operand.hbm [shape: s32[1,1], index: 3, kind: output, shape index: {}]  }
   0x1   :  { %v20_v0 = vld [vmem:[%s687_s1] sm:$0xff]  ;;  %494 = vset.pattern.permute.xlu0 %v527_v1  ;;  %495 = vset.pattern.permute.xlu1 %v527_v1 }
   0x2   :  { %v34_v2 = vadd.s32 8, %v20_v0 }
   0x3   :  { %8 = vsyncpa [#allocation3], 0  ;;  %27 = vperm.xlu0 %494, %v20_v0   ;;  %496 = vset.pattern.permute.xlu2 %v527_v1  ;;  %v21_v3 = vld [vmem:[%s687_s1 + $0x8] sm:$0x3]  ;;  %v22_v5 = vld [vmem:[%s688_s2] sm:$0xff]  ;;  %v24_v10 = vlaneseq  ;;  %v529_v18 = vmov 0.0  }
   0x4   :  { %37 = vperm.xlu1 %495, %v34_v2   ;;  %v35_v4 = vadd.s32 8, %v21_v3  ;;  %v57_v6 = vadd.s32 8, %v22_v5  ;;  %v16_v7 = vld [vmem:[%s686_s0] sm:$0xff]  ;;  %v17_v8 = vld [vmem:[%s686_s0 + $0x8] sm:$0xff]  ;;  %v528_v9 = vmov 1.0|1.0  }
   0x5   :  { %vm18_vm0 = vcmp.ne.s32.totalorder %v16_v7, 255  ;;  %vm19_vm1 = vcmp.ne.s32.totalorder %v17_v8, 255  ;;  %vm71_vm2 = vcmp.eq.s32.totalorder %v16_v7, 0  ;;  %vm72_vm3 = vcmp.eq.s32.totalorder %v17_v8, 0  ;;  %v23_v12 = vld [vmem:[%s688_s2 + $0x8] sm:$0x3] }
   0x6   :  { %vm73_vm4 = vmand %vm71_vm2, %vm18_vm0  ;;  %vm115_vm5 = vcmp.eq.s32.totalorder %v16_v7, 1  ;;  %vm116_vm7 = vcmp.eq.s32.totalorder %v17_v8, 1  ;;  %vm154_vm10 = vcmp.eq.s32.totalorder %v16_v7, 2  ;;  %vm155_vm12 = vcmp.eq.s32.totalorder %v17_v8, 2  ;;  %53 = vperm.xlu2 %496, %v23_v12   ;;  %s455_s23 = sshll.u32 %s689_s3, 4  ;;  %s530_s24 = smov [#allocation2]   ;;  %s456_s23 = int_to_ptr.hbm [resolvable:$true] %s455_s23 }
   0x7   :  { %vm74_vm6 = vmand %vm72_vm3, %vm19_vm1  ;;  %vm193_vm15 = vcmp.eq.s32.totalorder %v16_v7, 3  ;;  %vm194_vm3 = vcmp.eq.s32.totalorder %v17_v8, 3  ;;  %v25_v14 = vand.u32 127, %v24_v10  ;;  %v58_v15 = vadd.s32 8, %v23_v12  ;;  %s453_s25 = sshll.u32 %s530_s24, 4  ;;  %s454_s25 = int_to_ptr.vmem [resolvable:$true] %s453_s25 }
   0x8   :  { %vm464_vm8 = vmpackc.low %vm74_vm6, %vm73_vm4 }
   0x9   :  { %465 = vmatpush.bf16.msk.msra.mxu0 %vm464_vm8, %v528_v9  ;;  %vm117_vm9 = vmand %vm115_vm5, %vm18_vm0  ;;  %vm310_vm5 = vcmp.eq.s32.totalorder %v16_v7, 6 }
   0xa   :  { %vm118_vm11 = vmand %vm116_vm7, %vm19_vm1  ;;  %vm311_vm7 = vcmp.eq.s32.totalorder %v17_v8, 6 }
   0xb   :  { %30 = vperm.xlu0 %494, %v21_v3   ;;  %vm467_vm13 = vmpackc.low %vm118_vm11, %vm117_vm9 }
   0xc   :  { %40 = vperm.xlu1 %495, %v35_v4   ;;  %468 = vmatpush.bf16.msk.msra.mxu1 %vm467_vm13, %v528_v9  ;;  %vm156_vm14 = vmand %vm154_vm10, %vm18_vm0  ;;  %vm271_vm13 = vcmp.eq.s32.totalorder %v16_v7, 5 }
   0xd   :  { %vm157_vm2 = vmand %vm155_vm12, %vm19_vm1  ;;  %vm272_vm12 = vcmp.eq.s32.totalorder %v17_v8, 5 }
   0xe   :  { %vm470_vm4 = vmpackc.low %vm157_vm2, %vm156_vm14  ;;  %63 = vperm.xlu2 %496, %v58_v15  }
   0xf   :  { %471 = vmatpush.bf16.msk.msra.mxu2 %vm470_vm4, %v528_v9  ;;  %vm195_vm6 = vmand %vm193_vm15, %vm18_vm0  ;;  %vm232_vm4 = vcmp.eq.s32.totalorder %v16_v7, 4 }
  0x10   :  { %vm196_vm8 = vmand %vm194_vm3, %vm19_vm1  ;;  %vm233_vm3 = vcmp.eq.s32.totalorder %v17_v8, 4 }
  0x11   :  { %vm473_vm9 = vmpackc.low %vm196_vm8, %vm195_vm6 }
  0x12   :  { %474 = vmatpush.bf16.msk.msra.mxu3 %vm473_vm9, %v528_v9  ;;  %vm312_vm11 = vmand %vm310_vm5, %vm18_vm0  ;;  %vm349_vm9 = vcmp.eq.s32.totalorder %v16_v7, 7 }
  0x13   :  { %50 = vperm.xlu0 %494, %v22_v5   ;;  %vm313_vm10 = vmand %vm311_vm7, %vm19_vm1  ;;  %vm350_vm7 = vcmp.eq.s32.totalorder %v17_v8, 7 }
  0x14   :  { %60 = vperm.xlu1 %495, %v57_v6   ;;  %vm482_vm2 = vmpackc.low %vm313_vm10, %vm312_vm11 }
  0x15   :  { %483 = vmatpush.bf16.msk.msrb.mxu2 %vm482_vm2, %v528_v9  ;;  %vm273_vm14 = vmand %vm271_vm13, %vm18_vm0 }
  0x16   :  { %vm274_vm15 = vmand %vm272_vm12, %vm19_vm1 }
  0x17   :  { %vm479_vm6 = vmpackc.low %vm274_vm15, %vm273_vm14 }
  0x18   :  { %480 = vmatpush.bf16.msk.msrb.mxu1 %vm479_vm6, %v528_v9  ;;  %vm234_vm8 = vmand %vm232_vm4, %vm18_vm0 }
  0x19   :  { %vm235_vm5 = vmand %vm233_vm3, %vm19_vm1  ;;  %vm78_vm3 = vcmask 130048  }
  0x1a   :  { %vm476_vm10 = vmpackc.low %vm235_vm5, %vm234_vm8 }
  0x1b   :  { %477 = vmatpush.bf16.msk.msrb.mxu0 %vm476_vm10, %v528_v9  ;;  %vm351_vm11 = vmand %vm349_vm9, %vm18_vm0 }
  0x1c   :  { %vm352_vm13 = vmand %vm350_vm7, %vm19_vm1 }
  0x1d   :  { %vm485_vm12 = vmpackc.low %vm352_vm13, %vm351_vm11  ;;  %vm101_vm11 = vcmask 123904  }
  0x1e   :  { %486 = vmatpush.bf16.msk.msrb.mxu3 %vm485_vm12, %v528_v9 }
  0x60   :  { %v54_v24 = vpop.permute.xlu2 %53 }
  0x61   :  { %vm56_vm5 = vcmp.ge.s32.totalorder %v25_v14, %v54_v24 }
  0x68   :  { %v64_v30 = vpop.permute.xlu2 %63 }
  0x69   :  { %vm66_vm7 = vcmp.lt.s32.totalorder %v25_v14, %v64_v30 }
  0x6a   :  { %vm68_vm10 = vmand %vm56_vm5, %vm66_vm7 }
  0x6b   :  { %v70_v40 = vsel %vm68_vm10, 1.0, %v529_v18 }
  0x75   :  { %v28_v11 = vpop.permute.xlu0 %27 }
  0x76   :  { %v38_v13 = vpop.permute.xlu1 %37  ;;  %vm32_vm2 = vcmp.ge.s32.totalorder %v25_v14, %v28_v11 }
  0x77   :  { %vm42_vm14 = vcmp.lt.s32.totalorder %v25_v14, %v38_v13 }
  0x78   :  { %vm44_vm4 = vmand %vm32_vm2, %vm42_vm14 }
  0x79   :  { %v46_v19 = vsel %vm44_vm4, 1.0, %v529_v18 }
  0x7d   :  { %v31_v16 = vpop.permute.xlu0 %30 }
  0x7e   :  { %vm33_vm15 = vcmp.ge.s32.totalorder %v25_v14, %v31_v16  ;;  %v41_v17 = vpop.permute.xlu1 %40 }
  0x7f   :  { %vm43_vm0 = vcmp.lt.s32.totalorder %v25_v14, %v41_v17 }
  0x80   :  { %vm45_vm1 = vmand %vm33_vm15, %vm43_vm0 }
  0x81   :  { %v47_v20 = vsel %vm45_vm1, 1.0, %v529_v18 }
  0x82   :  { %v48_v21 = vpack.c.bf16 %v47_v20, %v46_v19 }
  0x84   :  { %466 = vmatmul.msk.bf16.vlgmr.msra.gmra.mxu0 %vm78_vm3, %v48_v21  ;;  %469 = vmatmul.msk.bf16.vlgmr.msra.gmra.mxu1 %vm78_vm3, %v48_v21 }
  0x85   :  { %472 = vmatmul.msk.bf16.vlgmr.msra.gmra.mxu2 %vm78_vm3, %v48_v21  ;;  %475 = vmatmul.msk.bf16.vlgmr.msra.gmra.mxu3 %vm78_vm3, %v48_v21  ;;  %v51_v22 = vpop.permute.xlu0 %50 }
  0x86   :  { %v61_v23 = vpop.permute.xlu1 %60  ;;  %vm55_vm6 = vcmp.ge.s32.totalorder %v25_v14, %v51_v22 }
  0x87   :  { %vm65_vm8 = vcmp.lt.s32.totalorder %v25_v14, %v61_v23 }
  0x88   :  { %vm67_vm9 = vmand %vm55_vm6, %vm65_vm8 }
  0x89   :  { %v597_v25 = vsel %vm67_vm9, 1.0, %v529_v18 }
  0x94   :  { %478 = vmatmul.msk.bf16.vlgmr.msrb.gmra.mxu0 %vm78_vm3, %v48_v21  ;;  %481 = vmatmul.msk.bf16.vlgmr.msrb.gmra.mxu1 %vm78_vm3, %v48_v21 }
  0x95   :  { %484 = vmatmul.msk.bf16.vlgmr.msrb.gmra.mxu2 %vm78_vm3, %v48_v21  ;;  %487 = vmatmul.msk.bf16.vlgmr.msrb.gmra.mxu3 %vm78_vm3, %v48_v21 }
 0x101   :  { %v91_v26 = vpop.f32.mrf.mxu0  ;;  %v131_v27 = vpop.f32.mrf.mxu1 }
 0x102   :  { %v96_v28 = vmul.f32 %v91_v26, %v597_v25  ;;  %v136_v29 = vmul.f32 %v131_v27, %v597_v25 }
 0x104   :  { %v138_v31 = vsel %vm78_vm3, %v136_v29, 0.0  ;;  %v98_v32 = vsel %vm78_vm3, %v96_v28, 0.0 }
 0x105   :  { %139 = vadd.xlane.f32.xlu2 %v138_v31  ;;  %99 = vadd.xlane.f32.xlu1 %v98_v32 }
 0x108   :  { %v170_v33 = vpop.f32.mrf.mxu2  ;;  %v209_v34 = vpop.f32.mrf.mxu3 }
 0x109   :  { %v175_v35 = vmul.f32 %v170_v33, %v597_v25  ;;  %v214_v36 = vmul.f32 %v209_v34, %v597_v25  ;;  %v93_v37 = vpop.f32.mrf.mxu0  ;;  %v133_v38 = vpop.f32.mrf.mxu1 }
 0x10a   :  { %v137_v42 = vmul.f32 %v133_v38, %v70_v40  ;;  %v97_v43 = vmul.f32 %v93_v37, %v70_v40 }
 0x10b   :  { %v177_v39 = vsel %vm78_vm3, %v175_v35, 0.0  ;;  %v216_v41 = vsel %vm78_vm3, %v214_v36, 0.0 }
 0x10c   :  { %178 = vadd.xlane.f32.xlu0 %v177_v39  ;;  %v141_v49 = vsel %vm101_vm11, %v137_v42, 0.0  ;;  %v102_v51 = vsel %vm101_vm11, %v97_v43, 0.0 }
 0x10d   :  { %217 = vadd.xlane.f32.xlu2 %v216_v41 }
 0x110   :  { %v172_v44 = vpop.f32.mrf.mxu2  ;;  %v211_v45 = vpop.f32.mrf.mxu3 }
 0x111   :  { %v215_v46 = vmul.f32 %v211_v45, %v70_v40  ;;  %v248_v47 = vpop.f32.mrf.mxu0  ;;  %v287_v48 = vpop.f32.mrf.mxu1  ;;  %v176_v54 = vmul.f32 %v172_v44, %v70_v40 }
 0x112   :  { %v253_v52 = vmul.f32 %v248_v47, %v597_v25  ;;  %v292_v53 = vmul.f32 %v287_v48, %v597_v25 }
 0x113   :  { %v219_v50 = vsel %vm101_vm11, %v215_v46, 0.0  ;;  %v180_v60 = vsel %vm101_vm11, %v176_v54, 0.0 }
 0x114   :  { %142 = vadd.xlane.f32.xlu0 %v141_v49  ;;  %220 = vadd.xlane.f32.xlu1 %v219_v50  ;;  %v294_v57 = vsel %vm78_vm3, %v292_v53, 0.0  ;;  %v255_v58 = vsel %vm78_vm3, %v253_v52, 0.0 }
 0x115   :  { %103 = vadd.xlane.f32.xlu2 %v102_v51 }
 0x118   :  { %v326_v55 = vpop.f32.mrf.mxu2  ;;  %v365_v56 = vpop.f32.mrf.mxu3 }
 0x119   :  { %v250_v59 = vpop.f32.mrf.mxu0  ;;  %v289_v61 = vpop.f32.mrf.mxu1  ;;  %v370_v6 = vmul.f32 %v365_v56, %v597_v25  ;;  %v331_v8 = vmul.f32 %v326_v55, %v597_v25 }
 0x11a   :  { %v254_v62 = vmul.f32 %v250_v59, %v70_v40  ;;  %v293_v63 = vmul.f32 %v289_v61, %v70_v40 }
 0x11b   :  { %v372_v9 = vsel %vm78_vm3, %v370_v6, 0.0  ;;  %v333_v12 = vsel %vm78_vm3, %v331_v8, 0.0 }
 0x11c   :  { %295 = vadd.xlane.f32.xlu0 %v294_v57  ;;  %256 = vadd.xlane.f32.xlu1 %v255_v58  ;;  %v258_v3 = vsel %vm101_vm11, %v254_v62, 0.0  ;;  %v297_v5 = vsel %vm101_vm11, %v293_v63, 0.0 }
 0x11d   :  { %181 = vadd.xlane.f32.xlu2 %v180_v60 }
 0x120   :  { %v328_v0 = vpop.f32.mrf.mxu2  ;;  %v367_v4 = vpop.f32.mrf.mxu3 }
 0x121   :  { %v332_v1 = vmul.f32 %v328_v0, %v70_v40  ;;  %v371_v7 = vmul.f32 %v367_v4, %v70_v40 }
 0x123   :  { %v336_v2 = vsel %vm101_vm11, %v332_v1, 0.0  ;;  %v375_v11 = vsel %vm101_vm11, %v371_v7, 0.0 }
 0x124   :  { %337 = vadd.xlane.f32.xlu1 %v336_v2  ;;  %259 = vadd.xlane.f32.xlu0 %v258_v3 }
 0x125   :  { %298 = vadd.xlane.f32.xlu2 %v297_v5 }
 0x12c   :  { %373 = vadd.xlane.f32.xlu1 %v372_v9  ;;  %376 = vadd.xlane.f32.xlu0 %v375_v11 }
 0x12d   :  { %334 = vadd.xlane.f32.xlu2 %v333_v12 }
 0x178   :  { %v140_v13 = vpop.xlane.xlu2 %139  ;;  %v100_v14 = vpop.xlane.xlu1 %99 }
 0x179   :  { %v146_v26 = vadd.f32 %v140_v13, %v100_v14  ;;  %vm148_vm13 = vcmp.gt.f32.partialorder %v140_v13, 0.5  ;;  %vm109_vm12 = vcmp.gt.f32.partialorder %v100_v14, 0.5  ;;  %v105_v36 = vmax.f32 %v100_v14, 0.0 }
 0x17a   :  { %v150_v38 = vsel %vm148_vm13, 1.0, %v529_v18  ;;  %v111_v39 = vsel %vm109_vm12, 1.0, %v529_v18 }
 0x17b   :  { %v152_v45 = vadd.f32 %v150_v38, %v111_v39  ;;  %v144_v46 = vmax.f32 %v105_v36, %v140_v13 }
 0x17f   :  { %v624_v15 = vpop.xlane.xlu0 %178 }
 0x180   :  { %v218_v16 = vpop.xlane.xlu2 %217  ;;  %v185_v27 = vadd.f32 %v624_v15, %v146_v26  ;;  %vm187_vm15 = vcmp.gt.f32.partialorder %v624_v15, 0.5  ;;  %v183_v56 = vmax.f32 %v144_v46, %v624_v15 }
 0x181   :  { %v189_v50 = vsel %vm187_vm15, 1.0, %v529_v18  ;;  %vm226_vm0 = vcmp.gt.f32.partialorder %v218_v16, 0.5 }
 0x182   :  { %v224_v33 = vadd.f32 %v218_v16, %v185_v27  ;;  %v191_v59 = vadd.f32 %v189_v50, %v152_v45  ;;  %v228_v60 = vsel %vm226_vm0, 1.0, %v529_v18  ;;  %v222_v3 = vmax.f32 %v183_v56, %v218_v16 }
 0x184   :  { %v230_v6 = vadd.f32 %v228_v60, %v191_v59 }
 0x187   :  { %v143_v17 = vpop.xlane.xlu0 %142  ;;  %v221_v19 = vpop.xlane.xlu1 %220 }
 0x188   :  { %v104_v20 = vpop.xlane.xlu2 %103  ;;  %vm149_vm14 = vcmp.gt.f32.partialorder %v143_v17, 0.5  ;;  %vm227_vm1 = vcmp.gt.f32.partialorder %v221_v19, 0.5 }
 0x189   :  { %v147_v23 = vadd.f32 %v143_v17, %v104_v20  ;;  %vm110_vm2 = vcmp.gt.f32.partialorder %v104_v20, 0.5  ;;  %v106_v34 = vmax.f32 %v104_v20, 0.0  ;;  %v151_v41 = vsel %vm149_vm14, 1.0, %v529_v18 }
 0x18a   :  { %v112_v40 = vsel %vm110_vm2, 1.0, %v529_v18  ;;  %v229_v62 = vsel %vm227_vm1, 1.0, %v529_v18 }
 0x18b   :  { %v145_v42 = vmax.f32 %v106_v34, %v143_v17  ;;  %v153_v47 = vadd.f32 %v151_v41, %v112_v40  ;;  %v427_v17 = vshrl.u32 %v24_v10, 7 }
 0x18d   :  { %v428_v45 = vadd.s32 8, %v427_v17 }
 0x18f   :  { %v626_v21 = vpop.xlane.xlu0 %295  ;;  %v628_v22 = vpop.xlane.xlu1 %256 }
 0x190   :  { %v182_v24 = vpop.xlane.xlu2 %181  ;;  %v263_v37 = vadd.f32 %v628_v22, %v224_v33  ;;  %vm265_vm6 = vcmp.gt.f32.partialorder %v628_v22, 0.5  ;;  %v261_v8 = vmax.f32 %v222_v3, %v628_v22  ;;  %vm304_vm9 = vcmp.gt.f32.partialorder %v626_v21, 0.5 }
 0x191   :  { %v186_v25 = vadd.f32 %v182_v24, %v147_v23  ;;  %vm188_vm4 = vcmp.gt.f32.partialorder %v182_v24, 0.5  ;;  %v184_v51 = vmax.f32 %v145_v42, %v182_v24  ;;  %v267_v4 = vsel %vm265_vm6, 1.0, %v529_v18 }
 0x192   :  { %v190_v43 = vsel %vm188_vm4, 1.0, %v529_v18  ;;  %v302_v49 = vadd.f32 %v626_v21, %v263_v37  ;;  %v269_v11 = vadd.f32 %v267_v4, %v230_v6  ;;  %v306_v16 = vsel %vm304_vm9, 1.0, %v529_v18 }
 0x193   :  { %v225_v28 = vadd.f32 %v221_v19, %v186_v25  ;;  %v192_v54 = vadd.f32 %v190_v43, %v153_v47  ;;  %v223_v63 = vmax.f32 %v184_v51, %v221_v19  ;;  %v300_v19 = vmax.f32 %v261_v8, %v626_v21 }
 0x194   :  { %v308_v24 = vadd.f32 %v306_v16, %v269_v11  ;;  %vm431_vm9 = vcmask 1041408  }
 0x195   :  { %v231_v1 = vadd.f32 %v229_v62, %v192_v54 }
 0x197   :  { %v631_v29 = vpop.xlane.xlu0 %259  ;;  %v633_v30 = vpop.xlane.xlu1 %337 }
 0x198   :  { %v264_v31 = vadd.f32 %v631_v29, %v225_v28  ;;  %v299_v32 = vpop.xlane.xlu2 %298  ;;  %vm266_vm3 = vcmp.gt.f32.partialorder %v631_v29, 0.5  ;;  %v262_v5 = vmax.f32 %v223_v63, %v631_v29  ;;  %vm344_vm5 = vcmp.gt.f32.partialorder %v633_v30, 0.5 }
 0x199   :  { %v268_v0 = vsel %vm266_vm3, 1.0, %v529_v18  ;;  %vm305_vm8 = vcmp.gt.f32.partialorder %v299_v32, 0.5  ;;  %v346_v22 = vsel %vm344_vm5, 1.0, %v529_v18 }
 0x19a   :  { %v303_v35 = vadd.f32 %v299_v32, %v264_v31  ;;  %v270_v7 = vadd.f32 %v268_v0, %v231_v1  ;;  %v307_v9 = vsel %vm305_vm8, 1.0, %v529_v18  ;;  %v301_v13 = vmax.f32 %v262_v5, %v299_v32 }
 0x19c   :  { %v342_v44 = vadd.f32 %v633_v30, %v303_v35  ;;  %v309_v14 = vadd.f32 %v307_v9, %v270_v7  ;;  %v340_v25 = vmax.f32 %v301_v13, %v633_v30 }
 0x19e   :  { %v348_v29 = vadd.f32 %v346_v22, %v309_v14 }
 0x19f   :  { %v644_v48 = vpop.xlane.xlu0 %376  ;;  %v654_v57 = vpop.xlane.xlu1 %373 }
 0x1a0   :  { %v381_v52 = vadd.f32 %v644_v48, %v342_v44  ;;  %v649_v53 = vpop.xlane.xlu2 %334  ;;  %vm383_vm10 = vcmp.gt.f32.partialorder %v644_v48, 0.5  ;;  %vm382_vm13 = vcmp.gt.f32.partialorder %v654_v57, 0.5  ;;  %v379_v39 = vmax.f32 %v340_v25, %v644_v48 }
 0x1a1   :  { %v341_v55 = vadd.f32 %v649_v53, %v302_v49  ;;  %vm343_vm7 = vcmp.gt.f32.partialorder %v649_v53, 0.5  ;;  %v385_v10 = vsel %vm383_vm10, 1.0, %v529_v18  ;;  %v339_v21 = vmax.f32 %v300_v19, %v649_v53 }
 0x1a2   :  { %v389_v58 = vmax.f32 %v381_v52, 1.0  ;;  %v345_v27 = vsel %vm343_vm7, 1.0, %v529_v18  ;;  %v387_v40 = vadd.f32 %v385_v10, %v348_v29  ;;  %v384_v44 = vsel %vm382_vm13, 1.0, %v529_v18 }
 0x1a3   :  { %v380_v61 = vadd.f32 %v654_v57, %v341_v55  ;;  %v347_v35 = vadd.f32 %v345_v27, %v308_v24  ;;  %v378_v49 = vmax.f32 %v339_v21, %v654_v57 }
 0x1a4   :  { %497 = vrcp.f32 %v389_v58  ;;  %v416_v26 = vand.u32 2147483648, %v389_v58  ;;  %v414_v32 = vand.u32 2147483647, %v389_v58  ;;  %vm410_vm12 = vweird.f32 %v389_v58 }
 0x1a5   :  { %v388_v2 = vmax.f32 %v380_v61, 1.0  ;;  %v386_v50 = vadd.f32 %v384_v44, %v347_v35  ;;  %vm421_vm3 = vcmp.gt.f32.partialorder %v387_v40, 1.5 }
 0x1a6   :  { %v417_v30 = vor.u32 1.1754944e-38, %v416_v26  ;;  %vm415_vm4 = vcmp.eq.f32.partialorder %v414_v32, 8.507059e+37 }
 0x1a7   :  { %499 = vrcp.f32 %v388_v2  ;;  %v401_v36 = vand.u32 2147483648, %v388_v2  ;;  %v399_v38 = vand.u32 2147483647, %v388_v2  ;;  %vm395_vm15 = vweird.f32 %v388_v2 }
 0x1a8   :  { %vm420_vm5 = vcmp.gt.f32.partialorder %v386_v50, 1.5 }
 0x1a9   :  { %v402_v47 = vor.u32 1.1754944e-38, %v401_v36  ;;  %vm400_vm1 = vcmp.eq.f32.partialorder %v399_v38, 8.507059e+37 }
 0x1aa   :  { %v498_v12 = vpop.eup %497 }
 0x1ab   :  { %v406_v15 = vmul.f32 %v498_v12, %v389_v58  ;;  %vm411_vm11 = vweird.f32 %v498_v12 }
 0x1ac   :  { %vm412_vm2 = vmor %vm410_vm12, %vm411_vm11 }
 0x1ad   :  { %v500_v20 = vpop.eup %499  ;;  %v407_v23 = vsub.f32 1.0, %v406_v15 }
 0x1ae   :  { %v391_v28 = vmul.f32 %v500_v20, %v388_v2  ;;  %vm396_vm14 = vweird.f32 %v500_v20 }
 0x1af   :  { %v408_v31 = vmul.f32 %v498_v12, %v407_v23  ;;  %vm397_vm0 = vmor %vm395_vm15, %vm396_vm14  ;;  %vm446_vm14 = vcmask 0  }
 0x1b0   :  { %v392_v33 = vsub.f32 1.0, %v391_v28 }
 0x1b1   :  { %v409_v34 = vadd.f32 %v498_v12, %v408_v31 }
 0x1b2   :  { %v393_v37 = vmul.f32 %v500_v20, %v392_v33 }
 0x1b3   :  { %v413_v41 = vsel %vm412_vm2, %v498_v12, %v409_v34 }
 0x1b4   :  { %v418_v42 = vsel %vm415_vm4, %v417_v30, %v413_v41  ;;  %v394_v43 = vadd.f32 %v500_v20, %v393_v37 }
 0x1b5   :  { %v419_v46 = vmul.f32 %v418_v42, %v379_v39 }
 0x1b6   :  { %v398_v51 = vsel %vm397_vm0, %v500_v20, %v394_v43 }
 0x1b7   :  { %vm423_vm6 = vcmp.lt.f32.partialorder %v419_v46, 0.75  ;;  %v403_v48 = vsel %vm400_vm1, %v402_v47, %v398_v51 }
 0x1b8   :  { %vm425_vm8 = vmand %vm421_vm3, %vm423_vm6  ;;  %v404_v52 = vmul.f32 %v403_v48, %v378_v49 }
 0x1b9   :  { %v430_v53 = vsel %vm425_vm8, %v428_v45, 9 }
 0x1ba   :  { %vm422_vm7 = vcmp.lt.f32.partialorder %v404_v52, 0.75  ;;  %v432_v18 = vsel %vm431_vm9, %v430_v53, 2147483647 }
 0x1bb   :  { %vm424_vm10 = vmand %vm420_vm5, %vm422_vm7 }
 0x1bc   :  { %v429_v54 = vsel %vm424_vm10, %v427_v17, 9 }
 0x1bd   :  { %vm433_vm11 = vcmp.lt.s32.totalorder %v429_v54, %v432_v18 }
 0x1be   :  { %v434_v55 = vsel %vm433_vm11, %v429_v54, %v432_v18 }
 0x1bf   :  { %v435_v56 = vrot.slane %v434_v55, 4 }
 0x1c1   :  { %vm436_vm13 = vcmp.lt.s32.totalorder %v434_v55, %v435_v56 }
 0x1c2   :  { %v437_v57 = vsel %vm436_vm13, %v434_v55, %v435_v56 }
 0x1c3   :  { %v438_v58 = vrot.slane %v437_v57, 2 }
 0x1c5   :  { %vm439_vm12 = vcmp.lt.s32.totalorder %v437_v57, %v438_v58 }
 0x1c6   :  { %v440_v59 = vsel %vm439_vm12, %v437_v57, %v438_v58 }
 0x1c7   :  { %v441_v60 = vrot.slane %v440_v59, 1 }
 0x1c9   :  { %vm442_vm2 = vcmp.lt.s32.totalorder %v440_v59, %v441_v60 }
 0x1ca   :  { %v443_v61 = vsel %vm442_vm2, %v440_v59, %v441_v60 }
 0x1cb   :  { %488 = vpush %v443_v61 }
 0x1fc   :  { %s489_s26 = spop %488 }
 0x1fd   :  { %v445_v62 = vstv %s489_s26 }
 0x1fe   :  { %447 = vst.msk [vmem:[#allocation2] sm:$0x1] %vm446_vm14, %v445_v62 }
 0x1ff   :  { %458 = dma.vmem_to_hbm [thread:$0]  %s454_s25, 16, %s456_s23, [#allocation3]  }
 0x200   :  { %525 = dma.done.wait [#allocation3], 16  }
 0x201   :  { %526 = vsyncadd [#allocation3], 4294967280 }
 0x202   :  { %463 = vsyncpa [#allocation3], 1 }

</bundles_post_ra>
